<compile_context>
chip_gen: v5e
topology: v5e:2x2
jax: 0.10.0
libtpu: 0.0.40
codegen_flags: <defaults>
</compile_context>

<pallas_src>
import math

import jax
import jax.numpy as jnp
from jax.experimental import pallas as pl
from jax.experimental.pallas import tpu as pltpu


def make_pe(d_model: int, height: int, width: int) -> jnp.ndarray:
    """Deterministic parameter setup (mirrors PositionalEncoding2D.__init__).

    Returns pe of shape [d_model, height, width], float32.
    """
    assert d_model % 4 == 0, "d_model must be a multiple of 4 for interleaved sin/cos"
    half = d_model // 2
    div_term = jnp.exp(
        jnp.arange(0.0, half, 2.0, dtype=jnp.float32) * -(math.log(10000.0) / half)
    )  # [half/2]
    pos_w = jnp.arange(0.0, width, dtype=jnp.float32)[:, None]   # [W, 1]
    pos_h = jnp.arange(0.0, height, dtype=jnp.float32)[:, None]  # [H, 1]

    sin_w = jnp.broadcast_to(jnp.sin(pos_w * div_term).T[:, None, :], (half // 2, height, width))
    cos_w = jnp.broadcast_to(jnp.cos(pos_w * div_term).T[:, None, :], (half // 2, height, width))
    sin_h = jnp.broadcast_to(jnp.sin(pos_h * div_term).T[:, :, None], (half // 2, height, width))
    cos_h = jnp.broadcast_to(jnp.cos(pos_h * div_term).T[:, :, None], (half // 2, height, width))

    pe = jnp.zeros((d_model, height, width), dtype=jnp.float32)
    pe = pe.at[0:half:2].set(sin_w)
    pe = pe.at[1:half:2].set(cos_w)
    pe = pe.at[half::2].set(sin_h)
    pe = pe.at[half + 1::2].set(cos_h)
    return pe


def _add_pe_kernel(x_ref, pe_ref, o_ref):
    # x_ref/o_ref: (tile_b, tile_n); pe_ref: (1, tile_n).
    # Broadcast add over batch; cast (if any) rides the VPU for free.
    o_ref[...] = (x_ref[...] + pe_ref[...]).astype(o_ref.dtype)


def _device_vmem_bytes() -> int:
    try:
        return int(pltpu.get_tpu_info().vmem_capacity_bytes)
    except Exception:
        return 64 * 1024 * 1024  # conservative (v7x per-TensorCore physical VMEM)


def _pick_tiles(B: int, N: int, itemsize: int, budget_bytes: int):
    """Pick (tile_b, tile_n) with tile_b a multiple of the dtype sublane quantum
    (or the full B extent) and tile_n a multiple of 128 (or the full N extent),
    keeping one x-block roughly under budget_bytes."""
    quantum = max(8, 32 // itemsize)  # f32 -> 8, bf16 -> 16, int8/fp8 -> 32
    tile_b = B if B <= quantum else quantum
    if tile_b * N * itemsize <= budget_bytes:
        tile_n = N  # full lane extent: always layout-legal, lane-dense
        max_b = budget_bytes // (N * itemsize)
        if max_b >= B:
            tile_b = B
        else:
            tile_b = max(tile_b, (max_b // quantum) * quantum)
    else:
        max_n = budget_bytes // (tile_b * itemsize)
        tile_n = max(128, (max_n // 128) * 128)
        if tile_n > N:
            tile_n = N
    return tile_b, tile_n


def positional_encoding_2d(x: jnp.ndarray, pe: jnp.ndarray,
                           *, block_budget_bytes: int | None = None) -> jnp.ndarray:
    """x: [B, C, H, W], pe: [C, H, W]  ->  x + pe (broadcast over batch)."""
    B, C, H, W = x.shape
    assert pe.shape == (C, H, W)
    N = C * H * W
    itemsize = jnp.dtype(x.dtype).itemsize

    vmem_bytes = _device_vmem_bytes()
    if block_budget_bytes is None:
        # ~1/16 of physical VMEM per x-block leaves room for 6 live double-buffered
        # blocks (x, out, pe) with large headroom on every generation (incl. v7x 64 MiB).
        block_budget_bytes = max(1 << 20, min(8 << 20, vmem_bytes // 16))

    tile_b, tile_n = _pick_tiles(B, N, itemsize, block_budget_bytes)

    # v7x has 2 TensorCores sharded over "parallel" grid axes: guarantee >= 2 steps
    # when the whole problem would otherwise be a single block.
    if pl.cdiv(N, tile_n) * pl.cdiv(B, tile_b) == 1 and N >= 256:
        half = pl.cdiv(N, 2)
        tile_n = ((half + 127) // 128) * 128

    # Free reshapes of contiguous data; pe is NOT cast in the wrapper (no extra
    # HBM pass) — any cast happens inside the kernel.
    x2 = x.reshape(B, N)
    pe2 = pe.reshape(1, N)

    # Explicit scoped-VMEM limit sized for the live buffers (x/out/pe, each 2x buffered).
    x_block_bytes = tile_b * tile_n * itemsize
    pe_block_bytes = tile_n * jnp.dtype(pe.dtype).itemsize
    needed = 2 * (2 * x_block_bytes) + 2 * pe_block_bytes
    vmem_limit = max(needed * 2 + (2 << 20), 16 << 20)
    vmem_limit = int(min(vmem_limit, vmem_bytes - (8 << 20)))

    # Lane-tile axis outer, batch inner -> the pe block stays resident across batch steps.
    grid = (pl.cdiv(N, tile_n), pl.cdiv(B, tile_b))

    out2 = pl.pallas_call(
        _add_pe_kernel,
        out_shape=jax.ShapeDtypeStruct((B, N), x.dtype),
        grid_spec=pl.GridSpec(
            grid=grid,
            in_specs=[
                pl.BlockSpec((tile_b, tile_n), lambda ni, bi: (bi, ni)),
                pl.BlockSpec((1, tile_n), lambda ni, bi: (0, ni)),
            ],
            out_specs=pl.BlockSpec((tile_b, tile_n), lambda ni, bi: (bi, ni)),
        ),
        compiler_params=pltpu.CompilerParams(
            dimension_semantics=("parallel", "parallel"),
            vmem_limit_bytes=vmem_limit,
        ),
    )(x2, pe2)

    return out2.reshape(B, C, H, W)


if __name__ == "__main__":
    # Small shapes consistent with the module: batch=2, d_model(channels)=8, 16x16.
    B, C, H, W = 2, 8, 16, 16

    key = jax.random.PRNGKey(0)
    x = jax.random.normal(key, (B, C, H, W), dtype=jnp.float32)

    pe = make_pe(C, H, W)

    out = positional_encoding_2d(x, pe)
    out = jax.block_until_ready(out)

    # Correctness check against the pure-JAX reference of forward(): x + pe
    ref = x + pe[None]
    assert out.shape == (B, C, H, W)
    assert out.dtype == x.dtype
    assert jnp.allclose(out, ref, atol=1e-6), "mismatch vs reference"

    print("KERNEL_OK")
</pallas_src>

<mosaic_0001>
module attributes {stable_mosaic.version = 11 : i64} {
  func.func @_add_pe_kernel(%arg0: i32, %arg1: i32, %arg2: memref<2x1024xf32, #tpu.memory_space<vmem>>, %arg3: memref<1x1024xf32, #tpu.memory_space<vmem>>, %arg4: memref<2x1024xf32, #tpu.memory_space<vmem>>) attributes {dimension_semantics = [#tpu.dimension_semantics<parallel>, #tpu.dimension_semantics<parallel>], iteration_bounds = array<i64: 2, 1>, scalar_prefetch = 0 : i64, scratch_operands = 0 : i64, tpu.core_type = #tpu.core_type<tc>, window_params = [{transform_indices = @transform_0, window_bounds = array<i64: 2, 1024>}, {transform_indices = @transform_1, window_bounds = array<i64: 1, 1024>}, {transform_indices = @transform_2, window_bounds = array<i64: 2, 1024>}]} {
    %c0 = arith.constant 0 : index
    %c0_0 = arith.constant 0 : index
    %0 = vector.load %arg2[%c0, %c0_0] : memref<2x1024xf32, #tpu.memory_space<vmem>>, vector<2x1024xf32>
    %c0_1 = arith.constant 0 : index
    %c0_2 = arith.constant 0 : index
    %1 = vector.load %arg3[%c0_1, %c0_2] : memref<1x1024xf32, #tpu.memory_space<vmem>>, vector<1x1024xf32>
    %2 = vector.broadcast %1 : vector<1x1024xf32> to vector<2x1024xf32>
    %3 = arith.addf %0, %2 : vector<2x1024xf32>
    %c0_3 = arith.constant 0 : index
    %c0_4 = arith.constant 0 : index
    %4 = vector.load %arg4[%c0_3, %c0_4] : memref<2x1024xf32, #tpu.memory_space<vmem>>, vector<2x1024xf32>
    tpu.vector_store %arg4[%c0_3, %c0_4], %3 {strides = array<i32>} : memref<2x1024xf32, #tpu.memory_space<vmem>>, vector<2x1024xf32>,
    return
  }
  func.func @transform_0(%arg0: i32, %arg1: i32) -> (i32, i32) {
    %c0_i32 = arith.constant 0 : i32
    return %arg1, %arg0 : i32, i32
  }
  func.func @transform_1(%arg0: i32, %arg1: i32) -> (i32, i32) {
    %c0_i32 = arith.constant 0 : i32
    %c0_i32_0 = arith.constant 0 : i32
    return %c0_i32, %arg0 : i32, i32
  }
  func.func @transform_2(%arg0: i32, %arg1: i32) -> (i32, i32) {
    %c0_i32 = arith.constant 0 : i32
    return %arg1, %arg0 : i32, i32
  }
}

</mosaic_0001>

<bundles_post_ra>
// kernel: tpu_custom_call.1
= control target key start
LH: loop header
LB: loop body
LE: loop exit
PB: predicated region body
PF: predicated region fallthrough
CT: control target
= control target key end

     0   :  { %7 = vsyncpa [#allocation3], 0  ;;  %s781_s0 = inlined_call_operand.hbm [shape: f32[2,2048], index: 0, kind: input, shape index: {}]   ;;  %s782_s1 = inlined_call_operand.hbm [shape: f32[1,2048], index: 1, kind: input, shape index: {}]   ;;  %s783_s2 = inlined_call_operand.hbm [shape: f32[2,2048], index: 2, kind: output, shape index: {}]  }
   0x1   :  { %9 = vsyncpa [#allocation3 + $0x1], 0 }
   0x2   :  { %10 = vsyncpa [#allocation6], 0 }
   0x3   :  { %12 = vsyncpa [#allocation6 + $0x1], 0 }
   0x4   :  { %13 = vsyncpa [#allocation4], 0 }
   0x5   :  { %15 = vsyncpa [#allocation4 + $0x1], 0  ;;  %s631_s9 = smov 0   ;;  %s633_s10 = smov 0  }
   0x6   :  { %s635_s11 = smov 0   ;;  %s637_s12 = smov 0  }
   0x7   :  { %s639_s13 = smov 0   ;;  %s641_s14 = smov 0  }
   0x8 LB: > { %s381_s15 = sadd.s32 4294967295, %s614_s14   ;;  %s382_s16 = sadd.s32 4294967294, %s614_s14   ;;  %s614_s14 = sphi %s641_s14, %s21_s14   ;;  %s610_s13 = sphi %s639_s13, %s793_s13   ;;  %s606_s12 = sphi %s637_s12, %s792_s12   ;;  %s602_s11 = sphi %s635_s11, %s791_s11   ;;  %s598_s10 = sphi %s633_s10, %s790_s10   ;;  %s594_s9 = sphi %s631_s9, %s789_s9  }
   0x9   : > { %s33_s17 = sadd.s32 1, %s610_s13  ;;  %s42_s18 = sadd.s32 1, %s602_s11 }
   0xa   : > { %p35_p0 = scmp.ge.s32.totalorder %s33_s17, 2  ;;  %p49_p1 = scmp.ne.s32.totalorder %s602_s11, %s598_s10 }
   0xb   : > { %p50_p2 = scmp.eq.s32.totalorder %s614_s14, 0  ;;  %p55_p3 = scmp.ne.s32.totalorder %s598_s10, %s594_s9 }
   0xc   : > { %s795_s17 = smov (%p35_p0, %s33_s17), 0  ;;  %p56_p5 = scmp.eq.s32.totalorder %s381_s15, 0 }
   0xd   : > { %p672_p4 = por %p50_p2, %p49_p1  ;;  %s38_s20 = ssub.s32 %s610_s13, %s795_s17 }
   0xe   : > { %p107_p6 = scmp.eq.s32.totalorder %s381_s15, 1  ;;  %p40_p7 = scmp.eq.s32.totalorder %s38_s20, 0 }
   0xf   : > { %p678_p8 = por %p56_p5, %p55_p3  ;;  %p113_p10 = scmp.eq.s32.totalorder %s382_s16, 1 }
  0x10   : > { %p682_p9 = por %p107_p6, %p49_p1  ;;  %p384_p12 = scmp.ge.s32.totalorder %s614_s14, 2 }
  0x11   : > { %s687_s23 = scalar_select %p40_p7, %s602_s11, %s42_s18  }
  0x12   : > { %p689_p11 = por %p113_p10, %p55_p3  ;;  %p418_p13 = scmp.lt.s32.totalorder %s614_s14, 2 }
  0x13   : > { %s133_s25 = sand.u32 1, %s602_s11   ;;  %s399_s27 = sshll.u32 %s610_s13, 4 }
  0x14   : > { %s385_s26 = sshll.u32 %s133_s25, 4  ;;  %s144_s30 = scalar_lea.hbm %s781_s0, %s399_s27 }
  0x15   : > { %s137_s3 = scalar_lea.vmem [#allocation2], %s385_s26  ;;  %s146_s5 = sshll.u32 %s144_s30, 4  ;;  %s147_s5 = int_to_ptr.hbm [resolvable:$true] %s146_s5 }
  0x16   : > { %s148_s4 = sshll.u32 %s137_s3, 4  ;;  %p702_p0 = pnand %p418_p13, %p672_p4  ;;  %s149_s4 = int_to_ptr.vmem [resolvable:$true] %s148_s4 }
  0x17   : > { %p390_p1 = scmp.ge.s32.totalorder %s614_s14, 1  ;;  %p172_p2 = scmp.lt.s32.totalorder %s614_s14, 3 }
  0x18   : > { %s134_s7 = scalar_lea.sflag [#allocation3], %s133_s25  ;;  %s388_s8 = sshll.u32 %s133_s25, 3 }
  0x19   : > { %410 = dma.hbm_to_vmem [thread:$0]  (!%p702_p0), %s147_s5, 256, %s149_s4, %s134_s7  }
  0x1a   : > { %p173_p3 = pnand %p390_p1, %p172_p2  ;;  %s389_s15 = sshll.u32 %s610_s13, 3 }
  0x1b   : > { %s163_s20 = scalar_lea.hbm %s782_s1, %s389_s15  ;;  %s159_s26 = scalar_lea.vmem [#allocation5], %s388_s8 }
  0x1c   : > { %s167_s19 = sshll.u32 %s159_s26, 4  ;;  %s165_s27 = sshll.u32 %s163_s20, 4  ;;  %s168_s19 = int_to_ptr.vmem [resolvable:$true] %s167_s19  ;;  %s166_s27 = int_to_ptr.hbm [resolvable:$true] %s165_s27 }
  0x1d   : > { %s156_s28 = scalar_lea.sflag [#allocation6], %s133_s25  ;;  %176 = sbr.rel (%p173_p3) target bundleno = 54 (0x36), region = 28 }
  0x1e   : > { %413 = dma.hbm_to_vmem [thread:$0]  (!%p702_p0), %s166_s27, 128, %s168_s19, %s156_s28  }
  0x1f   : > { %s717_s29 = sand.u32 (!%p173_p3), 1, %s598_s10  }
  0x20   : > { %s391_s30 = sshll.u32 (!%p173_p3), %s717_s29, 4  ;;  %s179_s3 = scalar_lea.sflag (!%p173_p3), [#allocation3], %s717_s29 }
  0x21   : > { %s723_s4 = scalar_lea.vmem (!%p173_p3), [#allocation2], %s391_s30 }
  0x22   : > { %581 = dma.done.wait (%p678_p8), %s179_s3, 256  }
  0x23   : > { %583 = vsyncadd (%p678_p8), %s179_s3, 4294967040  ;;  %s392_s25 = sshll.u32 %s717_s29, 3  ;;  %s189_s5 = scalar_lea.sflag [#allocation6], %s717_s29 }
  0x24   : > { %s192_s6 = scalar_lea.vmem [#allocation5], %s392_s25 }
  0x25   : > { %585 = dma.done.wait (%p678_p8), %s189_s5, 128  }
  0x26   : > { %587 = vsyncadd (%p678_p8), %s189_s5, 4294967168  ;;  %s400_s7 = sshll.u32 %s606_s12, 4  ;;  %v224_v0 = vld [vmem:[%s192_s6] sm:$0xff]  ;;  %vm240_vm0 = vcmask 1041408   ;;  %vm242_vm1 = vcmask 1045508   ;;  %vm244_vm2 = vcmask 1043456  }
  0x27   : > { %v226_v1 = vperm.slane %v224_v0, 0  ;;  %v227_v2 = vperm.slane %v224_v0, 1  ;;  %v228_v3 = vperm.slane %v224_v0, 2  ;;  %v229_v4 = vperm.slane %v224_v0, 3  ;;  %s269_s21 = scalar_lea.hbm %s783_s2, %s400_s7  ;;  %v222_v12 = vld [vmem:[%s723_s4] sm:$0xff]  ;;  %s218_s12 = scalar_lea.vmem [#allocation7], %s391_s30 }
  0x28   : > { %v230_v5 = vperm.slane %v224_v0, 4  ;;  %v231_v6 = vperm.slane %v224_v0, 5  ;;  %v232_v7 = vperm.slane %v224_v0, 6  ;;  %v233_v8 = vperm.slane %v224_v0, 7  ;;  %s271_s16 = sshll.u32 %s218_s12, 4  ;;  %v223_v18 = vld [vmem:[%s723_s4 + $0x8] sm:$0xff]  ;;  %s272_s16 = int_to_ptr.vmem [resolvable:$true] %s271_s16 }
  0x29   : > { %v234_v9 = vrot.slane %v227_v2, 6  ;;  %v235_v10 = vrot.slane %v228_v3, 4  ;;  %v236_v11 = vrot.slane %v229_v4, 2  ;;  %s273_s18 = sshll.u32 %s269_s21, 4  ;;  %s256_s20 = scalar_lea.sflag [#allocation4], %s717_s29  ;;  %s274_s18 = int_to_ptr.hbm [resolvable:$true] %s273_s18 }
  0x2a   : > { %v237_v13 = vrot.slane %v231_v6, 6  ;;  %v238_v14 = vrot.slane %v232_v7, 4  ;;  %v239_v15 = vrot.slane %v233_v8, 2  ;;  %s542_s26 = sshra.s32 %s274_s18, 4  ;;  %s548_s30 = scalar_lea.hbm %s783_s2, 32  ;;  %s543_s26 = int_to_ptr.hbm [resolvable:$true] %s542_s26 }
  0x2b   : > { %v241_v16 = vsel %vm240_vm0, %v226_v1, %v234_v9  ;;  %v243_v17 = vsel %vm242_vm1, %v235_v10, %v236_v11  ;;  %s544_s19 = scalar_lea.hbm %s543_s26, 16  ;;  %p549_p7 = scmp.lt.s32.totalorder %s543_s26, %s783_s2 }
  0x2c   : > { %v245_v19 = vsel %vm244_vm2, %v241_v16, %v243_v17  ;;  %v246_v20 = vsel %vm240_vm0, %v230_v5, %v237_v13  ;;  %v247_v21 = vsel %vm242_vm1, %v238_v14, %v239_v15  ;;  %p545_p4 = scmp.ne.s32.totalorder %s543_s26, %s544_s19  ;;  %p550_p8 = scmp.lt.s32.totalorder %s548_s30, %s544_s19 }
  0x2d   : > { %v251_v22 = vadd.f32 %v245_v19, %v222_v12  ;;  %v248_v23 = vsel %vm244_vm2, %v246_v20, %v247_v21 }
  0x2e   : > { %v252_v24 = vadd.f32 %v248_v23, %v223_v18  ;;  %p546_p5 = pnand %p545_p4, %p682_p9  ;;  %p551_p10 = por %p550_p8, %p549_p7 }
  0x2f   : > { %253 = vst [vmem:[%s218_s12] sm:$0xff] %v251_v22 }
  0x30   : > { %254 = vst [vmem:[%s218_s12 + $0x8] sm:$0xff] %v252_v24  ;;  %p547_p6 = pneg %p546_p5 }
  0x32   : > { %p552_p13 = pnand %p551_p10, %p547_p6 }
  0x34   : > { %555 = shalt.err (!%p552_p13)
}
  0x35   : > { %405 = dma.vmem_to_hbm [thread:$0]  (%p682_p9), %s272_s16, 256, %s274_s18, %s256_s20  }
  0x36 PF: > { %s285_s29 = sand.u32 1, %s594_s9   ;;  %p415_p0 = pnand %p384_p12, %p689_p11 }
  0x37   : > { %s286_s25 = scalar_lea.sflag [#allocation4], %s285_s29 }
  0x38   : > { %p416_p1 = pneg %p415_p0 }
  0x3a   : > { %589 = dma.done.wait (%p416_p1), %s286_s25, 256  }
  0x3b   : > { %591 = vsyncadd (%p416_p1), %s286_s25, 4294967040  ;;  %s21_s14 = sadd.s32 1, %s614_s14   ;;  %s789_s9 = smov %s598_s10 }
  0x3c   : > { %p18_p2 = scmp.ge.s32.totalorder %s21_s14, 4   ;;  %s790_s10 = smov %s602_s11 }
  0x3d   : > { %s791_s11 = smov %s687_s23  ;;  %s792_s12 = smov %s610_s13 }
  0x3e   : > { %s793_s13 = smov %s795_s17  ;;  %20 = sbr.rel (!%p18_p2) target bundleno = 8 (0x8), region = 86 }
  0x43   :  { %292 = vsyncpa [#allocation3], 1 }
  0x44   :  { %294 = vsyncpa [#allocation3 + $0x1], 1 }
  0x45   :  { %295 = vsyncpa [#allocation6], 1 }
  0x46   :  { %297 = vsyncpa [#allocation6 + $0x1], 1 }
  0x47   :  { %298 = vsyncpa [#allocation4], 1 }
  0x48   :  { %300 = vsyncpa [#allocation4 + $0x1], 1 }

</bundles_post_ra>
